<compile_context>
chip_gen: v7x
topology: tpu7x:2x2x1
jax: 0.10.0
libtpu: 0.0.40
codegen_flags: <defaults>
</compile_context>

<pallas_src>
import math

import jax
import jax.numpy as jnp
from jax.experimental import pallas as pl
from jax.experimental.pallas import tpu as pltpu

LAYERS = 7          # number of conv+sigmoid applications in Model.forward
_LANE = 128
_SUBLANE = 8
_TM_MAX = 8192      # max lane-tile width: (16, 8192) f32 = 512 KiB << VMEM on all gens
_SPLIT_MIN = 4096   # below this, one grid step (per-step ~0.35us overhead dominates)


def _round_up(x, m):
    return (x + m - 1) // m * m


def _cdiv(a, b):
    return -(-a // b)


def _fused_conv_chain_kernel(x_ref, w_ref, b_ref, o_ref):
    """x_ref: (Cp, TM)  w_ref: (Cp, Cp)  b_ref: (Cp, 1)  o_ref: (Cp, TM).

    Applies a -> sigmoid(W @ a + b) LAYERS times with everything resident in
    VMEM / vregs (no intermediate HBM traffic)."""
    cp, tm = o_ref.shape
    w_bf = w_ref[...].astype(jnp.bfloat16)           # cast once; MXU is bf16-native
    bias = jnp.broadcast_to(b_ref[...], (cp, tm))    # hoisted: ONE broadcast, not 7
    a = x_ref[...]
    for _ in range(LAYERS):                          # static unroll: 7 MXU matmuls
        y = jnp.dot(w_bf, a.astype(jnp.bfloat16),
                    preferred_element_type=jnp.float32) + bias
        # sigmoid(y) = 0.5*tanh(0.5*y) + 0.5 : a single EUP op per layer; the
        # mul/add go to the 4-wide VALU which has slack.
        a = 0.5 * jnp.tanh(0.5 * y) + 0.5
    o_ref[...] = a.astype(o_ref.dtype)


def _interior_chain(x_nchw, w_mat, b_vec):
    """Runs the fused 7-layer pointwise chain on every input pixel.

    x_nchw: (N, Cin, H, W) f32, w_mat: (Cout, Cin) f32, b_vec: (Cout,) f32
    returns (N, Cout, H, W) f32."""
    n, cin, h, w_sp = x_nchw.shape
    cout = w_mat.shape[0]
    cp = _round_up(max(cin, cout), _SUBLANE)          # 10 -> 16 channels
    m = n * h * w_sp

    # Tile selection: lane-dense with waste bounded to <~128 lanes per tile.
    # Large M: an even number (>=2) of grid steps so both v7x TensorCores work.
    if m <= _SPLIT_MIN:
        tm = _round_up(m, _LANE)                      # tiny input: single grid step
    else:
        nt = max(2, _cdiv(m, _TM_MAX))
        nt += nt % 2                                  # even grid for 2-TC split
        tm = _round_up(_cdiv(m, nt), _LANE)
    m_pad = _round_up(m, tm)
    grid_m = m_pad // tm

    # (N, C, H, W) -> (Cp, M_pad): pixels on the lane axis.  For N == 1 the
    # channel-major view is a pure reshape (no transpose copy).
    if n == 1:
        x_cm = x_nchw.reshape(cin, m)
    else:
        x_cm = jnp.transpose(x_nchw, (1, 0, 2, 3)).reshape(cin, m)
    if cp != cin or m_pad != m:
        x_cm = jnp.pad(x_cm, ((0, cp - cin), (0, m_pad - m)))
    # Padded weight rows/cols are zero, so dead channels never leak into real ones.
    w_p = (jnp.pad(w_mat, ((0, cp - cout), (0, cp - cin)))
           if (cp != cout or cp != cin) else w_mat)
    b_p = (jnp.pad(b_vec, (0, cp - cout)) if cp != cout else b_vec).reshape(cp, 1)

    cost = pl.CostEstimate(
        flops=2 * LAYERS * cp * cp * m_pad,
        transcendentals=LAYERS * cp * m_pad,
        bytes_accessed=(2 * cp * m_pad + cp * cp + cp) * 4,
    )

    y_cm = pl.pallas_call(
        _fused_conv_chain_kernel,
        out_shape=jax.ShapeDtypeStruct((cp, m_pad), jnp.float32),
        grid=(grid_m,),
        in_specs=[
            pl.BlockSpec((cp, tm), lambda i: (0, i)),     # activations tile
            pl.BlockSpec((cp, cp), lambda i: (0, 0)),     # weight (resident)
            pl.BlockSpec((cp, 1), lambda i: (0, 0)),      # bias column
        ],
        out_specs=pl.BlockSpec((cp, tm), lambda i: (0, i)),
        compiler_params=pltpu.CompilerParams(
            dimension_semantics=("parallel",)),           # megacore / 2-TC shardable
        cost_estimate=cost,
    )(x_cm, w_p, b_p)

    y = y_cm[:cout, :m]
    if n == 1:
        return y.reshape(1, cout, h, w_sp)
    return jnp.transpose(y.reshape(cout, n, h, w_sp), (1, 0, 2, 3))


@jax.jit
def model_forward(x_nchw, weight_oihw, bias):
    """7x (Conv2d(C,C,1,stride=1,padding=1) -> sigmoid), NCHW in / NCHW out."""
    n, cin, h, w_sp = x_nchw.shape
    cout = weight_oihw.shape[0]
    w_mat = weight_oihw[:, :, 0, 0].astype(jnp.float32)    # (Cout, Cin)
    b_vec = bias.astype(jnp.float32)

    # Interior pixels: 7 fused pointwise conv+sigmoid steps in a single kernel.
    interior = _interior_chain(x_nchw.astype(jnp.float32), w_mat, b_vec)

    # Border rings of the final (H+14, W+14) map: the ring at distance d from the
    # edge was created as zero padding by layer (7-d) and then pushed through the
    # remaining layers, so it equals the per-channel constant c_d = f^d(sigmoid(b)).
    ring = jax.nn.sigmoid(b_vec)
    rings = [ring]
    for _ in range(LAYERS - 1):
        ring = jax.nn.sigmoid(w_mat @ ring + b_vec)
        rings.append(ring)
    ring_tab = jnp.stack(rings, axis=0)                    # (7, Cout)

    hf, wf = h + 2 * LAYERS, w_sp + 2 * LAYERS

    # Assemble the output by concatenation (single output-sized write; no full
    # canvas broadcast followed by an interior overwrite).
    # Left / right vertical strips: value depends only on the column distance.
    left_cols = jnp.transpose(ring_tab, (1, 0))            # (Cout, 7)
    left = jnp.broadcast_to(left_cols[None, :, None, :], (n, cout, h, LAYERS))
    right = jnp.flip(left, axis=3)
    middle = jnp.concatenate([left, interior, right], axis=3)   # (n, C, h, wf)

    # Top / bottom horizontal strips (these include the corners).
    jj = jnp.arange(wf)
    dj = jnp.minimum(jj, wf - 1 - jj)
    di = jnp.arange(LAYERS)
    dist_top = jnp.minimum(di[:, None], dj[None, :])       # (7, wf), values in [0,7)
    top_hw = jnp.transpose(ring_tab[dist_top], (2, 0, 1))  # (Cout, 7, wf)
    top = jnp.broadcast_to(top_hw[None], (n, cout, LAYERS, wf))
    bottom = jnp.flip(top, axis=2)

    return jnp.concatenate([top, middle, bottom], axis=2)  # (n, C, hf, wf)


def _reference_forward(x, weight, bias):
    """Pure-JAX reference: literal pad -> 1x1 conv -> sigmoid, 7 times."""
    w2 = weight[:, :, 0, 0]
    y = x
    for _ in range(LAYERS):
        y = jnp.pad(y, ((0, 0), (0, 0), (1, 1), (1, 1)))
        y = jnp.einsum("oc,nchw->nohw", w2, y) + bias[None, :, None, None]
        y = jax.nn.sigmoid(y)
    return y


if __name__ == "__main__":
    key = jax.random.PRNGKey(0)
    kx, kw, kb = jax.random.split(key, 3)

    cin = cout = 10                       # the module hard-codes Conv2d(10, 10, 1)
    x = jax.random.normal(kx, (1, cin, 16, 16), dtype=jnp.float32)

    bound = 1.0 / math.sqrt(cin * 1 * 1)  # PyTorch Conv2d default init bounds
    weight = jax.random.uniform(kw, (cout, cin, 1, 1), minval=-bound,
                                maxval=bound, dtype=jnp.float32)
    bias = jax.random.uniform(kb, (cout,), minval=-bound, maxval=bound,
                              dtype=jnp.float32)

    out = model_forward(x, weight, bias)
    jax.block_until_ready(out)

    # Each of the 7 convs (padding=1, kernel=1) grows H and W by 2: 16 -> 30.
    assert out.shape == (1, cout, 30, 30), out.shape
    assert out.dtype == jnp.float32

    ref = _reference_forward(x, weight, bias)
    err = float(jnp.max(jnp.abs(out - ref)))
    # tolerance covers bf16 MXU operand rounding across the 7 chained layers
    assert err < 2e-2, f"max abs error vs reference: {err}"

    print("KERNEL_OK")
</pallas_src>

<mosaic_0001>
module attributes {stable_mosaic.version = 11 : i64} {
  func.func @_fused_conv_chain_kernel(%arg0: i32, %arg1: memref<16x256xf32, #tpu.memory_space<vmem>>, %arg2: memref<16x16xf32, #tpu.memory_space<vmem>>, %arg3: memref<16x1xf32, #tpu.memory_space<vmem>>, %arg4: memref<16x256xf32, #tpu.memory_space<vmem>>) attributes {dimension_semantics = [#tpu.dimension_semantics<parallel>], iteration_bounds = array<i64: 1>, scalar_prefetch = 0 : i64, scratch_operands = 0 : i64, tpu.core_type = #tpu.core_type<tc>, window_params = [{transform_indices = @transform_0, window_bounds = array<i64: 16, 256>}, {pipeline_mode = #tpu.pipeline_mode<synchronous>, transform_indices = @transform_1, window_bounds = array<i64: 16, 16>}, {pipeline_mode = #tpu.pipeline_mode<synchronous>, transform_indices = @transform_2, window_bounds = array<i64: 16, 1>}, {transform_indices = @transform_3, window_bounds = array<i64: 16, 256>}]} {
    %c0 = arith.constant 0 : index
    %c0_0 = arith.constant 0 : index
    %0 = vector.load %arg2[%c0, %c0_0] : memref<16x16xf32, #tpu.memory_space<vmem>>, vector<16x16xf32>
    %1 = arith.truncf %0 : vector<16x16xf32> to vector<16x16xbf16>
    %c0_1 = arith.constant 0 : index
    %c0_2 = arith.constant 0 : index
    %2 = vector.load %arg3[%c0_1, %c0_2] : memref<16x1xf32, #tpu.memory_space<vmem>>, vector<16x1xf32>
    %3 = vector.shape_cast %2 : vector<16x1xf32> to vector<16x1xf32>
    %4 = vector.broadcast %3 : vector<16x1xf32> to vector<16x256xf32>
    %c0_3 = arith.constant 0 : index
    %c0_4 = arith.constant 0 : index
    %5 = vector.load %arg1[%c0_3, %c0_4] : memref<16x256xf32, #tpu.memory_space<vmem>>, vector<16x256xf32>
    %6 = arith.truncf %5 : vector<16x256xf32> to vector<16x256xbf16>
    %cst = arith.constant dense<0.000000e+00> : vector<16x256xf32>
    %7 = tpu.matmul %1, %6, %cst {dimension_numbers = #tpu.dot_dimension_numbers<[1], [0], [0], [1], [0, 0, 1, 1], [], []>} : vector<16x16xbf16>, vector<16x256xbf16>, vector<16x256xf32> -> vector<16x256xf32>
    %8 = arith.addf %7, %4 : vector<16x256xf32>
    %cst_5 = arith.constant 5.000000e-01 : f32
    %9 = vector.broadcast %cst_5 : f32 to vector<16x256xf32>
    %10 = arith.mulf %9, %8 : vector<16x256xf32>
    %11 = math.tanh %10 : vector<16x256xf32>
    %cst_6 = arith.constant 5.000000e-01 : f32
    %12 = vector.broadcast %cst_6 : f32 to vector<16x256xf32>
    %13 = arith.mulf %12, %11 : vector<16x256xf32>
    %cst_7 = arith.constant 5.000000e-01 : f32
    %14 = vector.broadcast %cst_7 : f32 to vector<16x256xf32>
    %15 = arith.addf %13, %14 : vector<16x256xf32>
    %16 = arith.truncf %15 : vector<16x256xf32> to vector<16x256xbf16>
    %cst_8 = arith.constant dense<0.000000e+00> : vector<16x256xf32>
    %17 = tpu.matmul %1, %16, %cst_8 {dimension_numbers = #tpu.dot_dimension_numbers<[1], [0], [0], [1], [0, 0, 1, 1], [], []>} : vector<16x16xbf16>, vector<16x256xbf16>, vector<16x256xf32> -> vector<16x256xf32>
    %18 = arith.addf %17, %4 : vector<16x256xf32>
    %cst_9 = arith.constant 5.000000e-01 : f32
    %19 = vector.broadcast %cst_9 : f32 to vector<16x256xf32>
    %20 = arith.mulf %19, %18 : vector<16x256xf32>
    %21 = math.tanh %20 : vector<16x256xf32>
    %cst_10 = arith.constant 5.000000e-01 : f32
    %22 = vector.broadcast %cst_10 : f32 to vector<16x256xf32>
    %23 = arith.mulf %22, %21 : vector<16x256xf32>
    %cst_11 = arith.constant 5.000000e-01 : f32
    %24 = vector.broadcast %cst_11 : f32 to vector<16x256xf32>
    %25 = arith.addf %23, %24 : vector<16x256xf32>
    %26 = arith.truncf %25 : vector<16x256xf32> to vector<16x256xbf16>
    %cst_12 = arith.constant dense<0.000000e+00> : vector<16x256xf32>
    %27 = tpu.matmul %1, %26, %cst_12 {dimension_numbers = #tpu.dot_dimension_numbers<[1], [0], [0], [1], [0, 0, 1, 1], [], []>} : vector<16x16xbf16>, vector<16x256xbf16>, vector<16x256xf32> -> vector<16x256xf32>
    %28 = arith.addf %27, %4 : vector<16x256xf32>
    %cst_13 = arith.constant 5.000000e-01 : f32
    %29 = vector.broadcast %cst_13 : f32 to vector<16x256xf32>
    %30 = arith.mulf %29, %28 : vector<16x256xf32>
    %31 = math.tanh %30 : vector<16x256xf32>
    %cst_14 = arith.constant 5.000000e-01 : f32
    %32 = vector.broadcast %cst_14 : f32 to vector<16x256xf32>
    %33 = arith.mulf %32, %31 : vector<16x256xf32>
    %cst_15 = arith.constant 5.000000e-01 : f32
    %34 = vector.broadcast %cst_15 : f32 to vector<16x256xf32>
    %35 = arith.addf %33, %34 : vector<16x256xf32>
    %36 = arith.truncf %35 : vector<16x256xf32> to vector<16x256xbf16>
    %cst_16 = arith.constant dense<0.000000e+00> : vector<16x256xf32>
    %37 = tpu.matmul %1, %36, %cst_16 {dimension_numbers = #tpu.dot_dimension_numbers<[1], [0], [0], [1], [0, 0, 1, 1], [], []>} : vector<16x16xbf16>, vector<16x256xbf16>, vector<16x256xf32> -> vector<16x256xf32>
    %38 = arith.addf %37, %4 : vector<16x256xf32>
    %cst_17 = arith.constant 5.000000e-01 : f32
    %39 = vector.broadcast %cst_17 : f32 to vector<16x256xf32>
    %40 = arith.mulf %39, %38 : vector<16x256xf32>
    %41 = math.tanh %40 : vector<16x256xf32>
    %cst_18 = arith.constant 5.000000e-01 : f32
    %42 = vector.broadcast %cst_18 : f32 to vector<16x256xf32>
    %43 = arith.mulf %42, %41 : vector<16x256xf32>
    %cst_19 = arith.constant 5.000000e-01 : f32
    %44 = vector.broadcast %cst_19 : f32 to vector<16x256xf32>
    %45 = arith.addf %43, %44 : vector<16x256xf32>
    %46 = arith.truncf %45 : vector<16x256xf32> to vector<16x256xbf16>
    %cst_20 = arith.constant dense<0.000000e+00> : vector<16x256xf32>
    %47 = tpu.matmul %1, %46, %cst_20 {dimension_numbers = #tpu.dot_dimension_numbers<[1], [0], [0], [1], [0, 0, 1, 1], [], []>} : vector<16x16xbf16>, vector<16x256xbf16>, vector<16x256xf32> -> vector<16x256xf32>
    %48 = arith.addf %47, %4 : vector<16x256xf32>
    %cst_21 = arith.constant 5.000000e-01 : f32
    %49 = vector.broadcast %cst_21 : f32 to vector<16x256xf32>
    %50 = arith.mulf %49, %48 : vector<16x256xf32>
    %51 = math.tanh %50 : vector<16x256xf32>
    %cst_22 = arith.constant 5.000000e-01 : f32
    %52 = vector.broadcast %cst_22 : f32 to vector<16x256xf32>
    %53 = arith.mulf %52, %51 : vector<16x256xf32>
    %cst_23 = arith.constant 5.000000e-01 : f32
    %54 = vector.broadcast %cst_23 : f32 to vector<16x256xf32>
    %55 = arith.addf %53, %54 : vector<16x256xf32>
    %56 = arith.truncf %55 : vector<16x256xf32> to vector<16x256xbf16>
    %cst_24 = arith.constant dense<0.000000e+00> : vector<16x256xf32>
    %57 = tpu.matmul %1, %56, %cst_24 {dimension_numbers = #tpu.dot_dimension_numbers<[1], [0], [0], [1], [0, 0, 1, 1], [], []>} : vector<16x16xbf16>, vector<16x256xbf16>, vector<16x256xf32> -> vector<16x256xf32>
    %58 = arith.addf %57, %4 : vector<16x256xf32>
    %cst_25 = arith.constant 5.000000e-01 : f32
    %59 = vector.broadcast %cst_25 : f32 to vector<16x256xf32>
    %60 = arith.mulf %59, %58 : vector<16x256xf32>
    %61 = math.tanh %60 : vector<16x256xf32>
    %cst_26 = arith.constant 5.000000e-01 : f32
    %62 = vector.broadcast %cst_26 : f32 to vector<16x256xf32>
    %63 = arith.mulf %62, %61 : vector<16x256xf32>
    %cst_27 = arith.constant 5.000000e-01 : f32
    %64 = vector.broadcast %cst_27 : f32 to vector<16x256xf32>
    %65 = arith.addf %63, %64 : vector<16x256xf32>
    %66 = arith.truncf %65 : vector<16x256xf32> to vector<16x256xbf16>
    %cst_28 = arith.constant dense<0.000000e+00> : vector<16x256xf32>
    %67 = tpu.matmul %1, %66, %cst_28 {dimension_numbers = #tpu.dot_dimension_numbers<[1], [0], [0], [1], [0, 0, 1, 1], [], []>} : vector<16x16xbf16>, vector<16x256xbf16>, vector<16x256xf32> -> vector<16x256xf32>
    %68 = arith.addf %67, %4 : vector<16x256xf32>
    %cst_29 = arith.constant 5.000000e-01 : f32
    %69 = vector.broadcast %cst_29 : f32 to vector<16x256xf32>
    %70 = arith.mulf %69, %68 : vector<16x256xf32>
    %71 = math.tanh %70 : vector<16x256xf32>
    %cst_30 = arith.constant 5.000000e-01 : f32
    %72 = vector.broadcast %cst_30 : f32 to vector<16x256xf32>
    %73 = arith.mulf %72, %71 : vector<16x256xf32>
    %cst_31 = arith.constant 5.000000e-01 : f32
    %74 = vector.broadcast %cst_31 : f32 to vector<16x256xf32>
    %75 = arith.addf %73, %74 : vector<16x256xf32>
    %c0_32 = arith.constant 0 : index
    %c0_33 = arith.constant 0 : index
    %76 = vector.load %arg4[%c0_32, %c0_33] : memref<16x256xf32, #tpu.memory_space<vmem>>, vector<16x256xf32>
    tpu.vector_store %arg4[%c0_32, %c0_33], %75 {strides = array<i32>} : memref<16x256xf32, #tpu.memory_space<vmem>>, vector<16x256xf32>,
    return
  }
  func.func @transform_0(%arg0: i32) -> (i32, i32) {
    %c0_i32 = arith.constant 0 : i32
    %c0_i32_0 = arith.constant 0 : i32
    return %c0_i32, %arg0 : i32, i32
  }
  func.func @transform_1(%arg0: i32) -> (i32, i32) {
    %c0_i32 = arith.constant 0 : i32
    %c0_i32_0 = arith.constant 0 : i32
    %c0_i32_1 = arith.constant 0 : i32
    return %c0_i32, %c0_i32_0 : i32, i32
  }
  func.func @transform_2(%arg0: i32) -> (i32, i32) {
    %c0_i32 = arith.constant 0 : i32
    %c0_i32_0 = arith.constant 0 : i32
    %c0_i32_1 = arith.constant 0 : i32
    return %c0_i32, %c0_i32_0 : i32, i32
  }
  func.func @transform_3(%arg0: i32) -> (i32, i32) {
    %c0_i32 = arith.constant 0 : i32
    %c0_i32_0 = arith.constant 0 : i32
    return %c0_i32, %arg0 : i32, i32
  }
}

</mosaic_0001>

<bundles_post_ra>
// kernel: reverse
= control target key start
LH: loop header
LB: loop body
LE: loop exit
PB: predicated region body
PF: predicated region fallthrough
CT: control target
= control target key end

     0   :  { %v79_v3 = vlaneseq  ;;  %v72_v12 = vld [vmem:[#allocation0 + $0x7] ss:$-1 sm:$0xff]  ;;  %v86_v13 = vld [vmem:[#allocation0 + $0x17] ss:$-1 sm:$0xff]  ;;  %s406_s0 = inlined_call_operand.vmem [shape: f32[10,7,30], index: 0, kind: input, shape index: {}]   ;;  %s407_s1 = inlined_call_operand.vmem [shape: f32[10,7,30], index: 1, kind: output, shape index: {}]  }
   0x1   :  { %v48_v0 = vld [vmem:[%s406_s0] sm:$0xff]  ;;  %v50_v1 = vld [vmem:[%s406_s0 + $0x8] sm:$0xff]  ;;  %v52_v2 = vld [vmem:[%s406_s0 + $0x10] sm:$0xff]  ;;  %v73_v14 = vrot.slane %v72_v12, 1  ;;  %v87_v15 = vrot.slane %v86_v13, 1 }
   0x2   :  { %49 = vst [vmem:[#allocation0 + $0x8] sm:$0xff] %v48_v0  ;;  %51 = vst [vmem:[#allocation0 + $0x18] sm:$0xff] %v50_v1  ;;  %v54_v4 = vld [vmem:[%s406_s0 + $0x18] sm:$0xff]  ;;  %v56_v5 = vld [vmem:[%s406_s0 + $0x20] sm:$0xff]  ;;  %v350_v10 = vshrl.u32 %v79_v3, 7 }
   0x3   :  { %53 = vst [vmem:[#allocation0 + $0x28] sm:$0xff] %v52_v2  ;;  %v58_v6 = vld [vmem:[%s406_s0 + $0x28] sm:$0xff]  ;;  %55 = vst [vmem:[#allocation0 + $0x38] sm:$0xff] %v54_v4  ;;  %v60_v7 = vld [vmem:[%s406_s0 + $0x30] sm:$0xff] }
   0x4   :  { %57 = vst [vmem:[#allocation0 + $0x48] sm:$0xff] %v56_v5  ;;  %59 = vst [vmem:[#allocation0 + $0x58] sm:$0xff] %v58_v6  ;;  %v62_v8 = vld [vmem:[%s406_s0 + $0x38] sm:$0xff]  ;;  %v64_v9 = vld [vmem:[%s406_s0 + $0x40] sm:$0xff]  ;;  %vm81_vm0 = vcmp.lt.s32.totalorder %v350_v10, 7 }
   0x5   :  { %61 = vst [vmem:[#allocation0 + $0x68] sm:$0xff] %v60_v7  ;;  %63 = vst [vmem:[#allocation0 + $0x78] sm:$0xff] %v62_v8  ;;  %v66_v11 = vld [vmem:[%s406_s0 + $0x48] sm:$0xff]  ;;  %v100_v16 = vld [vmem:[#allocation0 + $0x27] ss:$-1 sm:$0xff] }
   0x6   :  { %65 = vst [vmem:[#allocation0 + $0x88] sm:$0xff] %v64_v9  ;;  %67 = vst [vmem:[#allocation0 + $0x98] sm:$0xff] %v66_v11  ;;  %v101_v17 = vrot.slane %v100_v16, 1  ;;  %v114_v18 = vld [vmem:[#allocation0 + $0x37] ss:$-1 sm:$0xff] }
   0x7   :  { %v128_v19 = vld [vmem:[#allocation0 + $0x47] ss:$-1 sm:$0xff]  ;;  %74 = vst [vmem:[#allocation1] sm:$0xff] %v73_v14  ;;  %88 = vst [vmem:[#allocation1 + $0x8] sm:$0xff] %v87_v15  ;;  %v115_v20 = vrot.slane %v114_v18, 1 }
   0x8   :  { %v129_v21 = vrot.slane %v128_v19, 1  ;;  %v142_v22 = vld [vmem:[#allocation0 + $0x57] ss:$-1 sm:$0xff]  ;;  %v156_v23 = vld [vmem:[#allocation0 + $0x67] ss:$-1 sm:$0xff]  ;;  %102 = vst [vmem:[#allocation1 + $0x10] sm:$0xff] %v101_v17 }
   0x9   :  { %v143_v24 = vrot.slane %v142_v22, 1  ;;  %v157_v25 = vrot.slane %v156_v23, 1  ;;  %v170_v26 = vld [vmem:[#allocation0 + $0x77] ss:$-1 sm:$0xff]  ;;  %v184_v27 = vld [vmem:[#allocation0 + $0x87] ss:$-1 sm:$0xff] }
   0xa   :  { %v77_v28 = vld [vmem:[#allocation0 + $0xf] ss:$-1 sm:$0xff]  ;;  %v91_v29 = vld [vmem:[#allocation0 + $0x1f] ss:$-1 sm:$0xff]  ;;  %116 = vst [vmem:[#allocation1 + $0x18] sm:$0xff] %v115_v20  ;;  %130 = vst [vmem:[#allocation1 + $0x20] sm:$0xff] %v129_v21 }
   0xb   :  { %v105_v30 = vld [vmem:[#allocation0 + $0x2f] ss:$-1 sm:$0xff]  ;;  %v78_v31 = vrot.slane %v77_v28, 1  ;;  %v92_v32 = vrot.slane %v91_v29, 1  ;;  %v119_v34 = vld [vmem:[#allocation0 + $0x3f] ss:$-1 sm:$0xff] }
   0xc   :  { %v106_v33 = vrot.slane %v105_v30, 1  ;;  %144 = vst [vmem:[#allocation1 + $0x28] sm:$0xff] %v143_v24  ;;  %158 = vst [vmem:[#allocation1 + $0x30] sm:$0xff] %v157_v25  ;;  %v171_v35 = vrot.slane %v170_v26, 1  ;;  %v120_v36 = vrot.slane %v119_v34, 1  ;;  %v185_v39 = vrot.slane %v184_v27, 1 }
   0xd   :  { %v133_v37 = vld [vmem:[#allocation0 + $0x4f] ss:$-1 sm:$0xff]  ;;  %v147_v38 = vld [vmem:[#allocation0 + $0x5f] ss:$-1 sm:$0xff]  ;;  %82 = vst.msk [vmem:[#allocation1] sm:$0xff] %vm81_vm0, %v78_v31  ;;  %96 = vst.msk [vmem:[#allocation1 + $0x8] sm:$0xff] %vm81_vm0, %v92_v32 }
   0xe   :  { %110 = vst.msk [vmem:[#allocation1 + $0x10] sm:$0xff] %vm81_vm0, %v106_v33  ;;  %v134_v40 = vrot.slane %v133_v37, 1  ;;  %v148_v41 = vrot.slane %v147_v38, 1  ;;  %v161_v42 = vld [vmem:[#allocation0 + $0x6f] ss:$-1 sm:$0xff]  ;;  %172 = vst [vmem:[#allocation1 + $0x38] sm:$0xff] %v171_v35 }
   0xf   :  { %v175_v43 = vld [vmem:[#allocation0 + $0x7f] ss:$-1 sm:$0xff]  ;;  %124 = vst.msk [vmem:[#allocation1 + $0x18] sm:$0xff] %vm81_vm0, %v120_v36  ;;  %v162_v44 = vrot.slane %v161_v42, 1  ;;  %186 = vst [vmem:[#allocation1 + $0x40] sm:$0xff] %v185_v39 }
  0x10   :  { %v176_v45 = vrot.slane %v175_v43, 1  ;;  %v189_v46 = vld [vmem:[#allocation0 + $0x8f] ss:$-1 sm:$0xff]  ;;  %v198_v47 = vld [vmem:[#allocation0 + $0x97] ss:$-1 sm:$0xff]  ;;  %138 = vst.msk [vmem:[#allocation1 + $0x20] sm:$0xff] %vm81_vm0, %v134_v40 }
  0x11   :  { %152 = vst.msk [vmem:[#allocation1 + $0x28] sm:$0xff] %vm81_vm0, %v148_v41  ;;  %v190_v48 = vrot.slane %v189_v46, 1  ;;  %v199_v49 = vrot.slane %v198_v47, 1  ;;  %v203_v50 = vld [vmem:[#allocation0 + $0x9f] ss:$-1 sm:$0xff]  ;;  %166 = vst.msk [vmem:[#allocation1 + $0x30] sm:$0xff] %vm81_vm0, %v162_v44 }
  0x12   :  { %180 = vst.msk [vmem:[#allocation1 + $0x38] sm:$0xff] %vm81_vm0, %v176_v45  ;;  %v204_v51 = vrot.slane %v203_v50, 1 }
  0x13   :  { %194 = vst.msk [vmem:[#allocation1 + $0x40] sm:$0xff] %vm81_vm0, %v190_v48  ;;  %200 = vst [vmem:[#allocation1 + $0x48] sm:$0xff] %v199_v49 }
  0x14   :  { %208 = vst.msk [vmem:[#allocation1 + $0x48] sm:$0xff] %vm81_vm0, %v204_v51  ;;  %v254_v52 = vld [vmem:[#allocation1] sm:$0xff]  ;;  %v256_v53 = vld [vmem:[#allocation1 + $0x8] sm:$0xff] }
  0x15   :  { %v258_v54 = vld [vmem:[#allocation1 + $0x10] sm:$0xff]  ;;  %255 = vst [vmem:[%s407_s1] sm:$0xff] %v254_v52  ;;  %257 = vst [vmem:[%s407_s1 + $0x8] sm:$0xff] %v256_v53 }
  0x16   :  { %259 = vst [vmem:[%s407_s1 + $0x10] sm:$0xff] %v258_v54  ;;  %v260_v55 = vld [vmem:[#allocation1 + $0x18] sm:$0xff] }
  0x17   :  { %261 = vst [vmem:[%s407_s1 + $0x18] sm:$0xff] %v260_v55  ;;  %v262_v56 = vld [vmem:[#allocation1 + $0x20] sm:$0xff] }
  0x18   :  { %v264_v57 = vld [vmem:[#allocation1 + $0x28] sm:$0xff]  ;;  %263 = vst [vmem:[%s407_s1 + $0x20] sm:$0xff] %v262_v56  ;;  %v266_v58 = vld [vmem:[#allocation1 + $0x30] sm:$0xff] }
  0x19   :  { %265 = vst [vmem:[%s407_s1 + $0x28] sm:$0xff] %v264_v57  ;;  %v268_v59 = vld [vmem:[#allocation1 + $0x38] sm:$0xff]  ;;  %267 = vst [vmem:[%s407_s1 + $0x30] sm:$0xff] %v266_v58 }
  0x1a   :  { %269 = vst [vmem:[%s407_s1 + $0x38] sm:$0xff] %v268_v59  ;;  %v270_v60 = vld [vmem:[#allocation1 + $0x40] sm:$0xff] }
  0x1b   :  { %271 = vst [vmem:[%s407_s1 + $0x40] sm:$0xff] %v270_v60  ;;  %v272_v61 = vld [vmem:[#allocation1 + $0x48] sm:$0xff] }
  0x1c   :  { %273 = vst [vmem:[%s407_s1 + $0x48] sm:$0xff] %v272_v61 }

// kernel: model_forward.1
= control target key start
LH: loop header
LB: loop body
LE: loop exit
PB: predicated region body
PF: predicated region fallthrough
CT: control target
= control target key end

     0   :  { %v538_v3 = vmov 0   ;;  %vm36_vm0 = vcmask 130048   ;;  %s651_s0 = inlined_call_operand.vmem [shape: f32[16,256], index: 0, kind: input, shape index: {}]   ;;  %s652_s1 = inlined_call_operand.vmem [shape: f32[16,16], index: 1, kind: input, shape index: {}]   ;;  %s653_s2 = inlined_call_operand.vmem [shape: f32[16,1], index: 2, kind: input, shape index: {}]   ;;  %s654_s3 = inlined_call_operand.vmem [shape: f32[16,256], index: 3, kind: output, shape index: {}]  }
   0x1   :  { %v31_v0 = vld [vmem:[%s651_s0 + $0x8] sm:$0xff]  ;;  %v33_v1 = vld [vmem:[%s651_s0 + $0x18] sm:$0xff]  ;;  %v30_v2 = vld [vmem:[%s651_s0] sm:$0xff]  ;;  %72 = vmatprep.mubr.bf16.mxu0 %v538_v3  ;;  %481 = vset.pattern.permute.xlu0 %v538_v3 }
   0x2   :  { %v35_v4 = vpack.c.bf16 %v33_v1, %v31_v0  ;;  %v32_v5 = vld [vmem:[%s651_s0 + $0x10] sm:$0xff]  ;;  %v15_v6 = vld [vmem:[%s652_s1] sm:$0xff]  ;;  %v16_v7 = vld [vmem:[%s652_s1 + $0x8] sm:$0xff]  ;;  %133 = vmatprep.mubr.bf16.mxu1 %v538_v3 }
   0x3   :  { %v34_v8 = vpack.c.bf16 %v32_v5, %v30_v2  ;;  %v18_v9 = vld [vmem:[%s653_s2] sm:$0xff]  ;;  %v583_v10 = vpack.c.bf16 %v16_v7, %v15_v6  ;;  %v19_v11 = vld [vmem:[%s653_s2 + $0x8] sm:$0xff] }
   0x4   :  { %40 = vmatprep.subr.bf16.mxu0 %v35_v4  ;;  %22 = vperm.xlu0 %481, %v18_v9  }
   0x5   :  { %41 = vmatpush1.bf16.msra.mxu0 %v34_v8 }
   0x8   :  { %473 = vmatmul.mubr.msk.bf16.vlgmr.msra.gmra.mrb[0].mxu0 %vm36_vm0, %v583_v10  ;;  %27 = vperm.xlu0 %481, %v19_v11  }
   0x9   :  { %194 = vmatprep.mubr.bf16.mxu0 %v538_v3 }
  0x83   :  { %v591_v12 = vpop.permute.xlu0 %22 }
  0x87   :  { %v594_v16 = vpop.permute.xlu0 %27 }
  0xdb   :  { %v74_v13 = vpop.f32.mrb[0].mxu0 }
  0xdc   :  { %v75_v14 = vadd.f32 %v74_v13, %v591_v12  ;;  %v76_v15 = vpop.f32.mrb[1].mxu0 }
  0xdd   :  { %v77_v17 = vadd.f32 %v76_v15, %v591_v12  ;;  %v78_v18 = vpop.f32.mrb[2].mxu0 }
  0xde   :  { %v83_v19 = vmul.f32 0.5, %v75_v14  ;;  %v79_v20 = vadd.f32 %v78_v18, %v594_v16  ;;  %v80_v21 = vpop.f32.mrb[3].mxu0 }
  0xdf   :  { %v84_v22 = vmul.f32 0.5, %v77_v17  ;;  %v81_v23 = vadd.f32 %v80_v21, %v594_v16 }
  0xe0   :  { %482 = vtanh.f32 %v83_v19  ;;  %v85_v24 = vmul.f32 0.5, %v79_v20 }
  0xe1   :  { %484 = vtanh.f32 %v84_v22  ;;  %v86_v25 = vmul.f32 0.5, %v81_v23 }
  0xe2   :  { %486 = vtanh.f32 %v85_v24 }
  0xe3   :  { %488 = vtanh.f32 %v86_v25 }
  0xea   :  { %v483_v26 = vpop.eup %482 }
  0xeb   :  { %v485_v27 = vpop.eup %484  ;;  %v91_v28 = vmul.f32 0.5, %v483_v26 }
  0xec   :  { %v487_v29 = vpop.eup %486  ;;  %v92_v30 = vmul.f32 0.5, %v485_v27 }
  0xed   :  { %v489_v31 = vpop.eup %488  ;;  %v93_v32 = vmul.f32 0.5, %v487_v29  ;;  %v95_v34 = vadd.f32 0.5, %v91_v28 }
  0xee   :  { %v94_v33 = vmul.f32 0.5, %v489_v31  ;;  %v96_v36 = vadd.f32 0.5, %v92_v30 }
  0xef   :  { %v97_v35 = vadd.f32 0.5, %v93_v32 }
  0xf0   :  { %v98_v37 = vadd.f32 0.5, %v94_v33 }
  0xf1   :  { %v99_v38 = vpack.c.bf16 %v97_v35, %v95_v34 }
  0xf2   :  { %v100_v39 = vpack.c.bf16 %v98_v37, %v96_v36 }
  0xf4   :  { %101 = vmatprep.subr.bf16.mxu1 %v100_v39 }
  0xf5   :  { %102 = vmatpush1.bf16.msra.mxu1 %v99_v38 }
  0xf8   :  { %474 = vmatmul.mubr.msk.bf16.vlgmr.msra.gmra.mrb[0].mxu1 %vm36_vm0, %v583_v10 }
  0xf9   :  { %255 = vmatprep.mubr.bf16.mxu1 %v538_v3 }
 0x1cb   :  { %v135_v40 = vpop.f32.mrb[0].mxu1 }
 0x1cc   :  { %v136_v41 = vadd.f32 %v135_v40, %v591_v12  ;;  %v137_v42 = vpop.f32.mrb[1].mxu1 }
 0x1cd   :  { %v138_v43 = vadd.f32 %v137_v42, %v591_v12  ;;  %v139_v44 = vpop.f32.mrb[2].mxu1 }
 0x1ce   :  { %v144_v45 = vmul.f32 0.5, %v136_v41  ;;  %v140_v46 = vadd.f32 %v139_v44, %v594_v16  ;;  %v141_v47 = vpop.f32.mrb[3].mxu1 }
 0x1cf   :  { %v145_v48 = vmul.f32 0.5, %v138_v43  ;;  %v142_v49 = vadd.f32 %v141_v47, %v594_v16 }
 0x1d0   :  { %490 = vtanh.f32 %v144_v45  ;;  %v146_v50 = vmul.f32 0.5, %v140_v46 }
 0x1d1   :  { %492 = vtanh.f32 %v145_v48  ;;  %v147_v51 = vmul.f32 0.5, %v142_v49 }
 0x1d2   :  { %494 = vtanh.f32 %v146_v50 }
 0x1d3   :  { %496 = vtanh.f32 %v147_v51 }
 0x1da   :  { %v491_v52 = vpop.eup %490 }
 0x1db   :  { %v493_v53 = vpop.eup %492  ;;  %v152_v54 = vmul.f32 0.5, %v491_v52 }
 0x1dc   :  { %v495_v55 = vpop.eup %494  ;;  %v153_v56 = vmul.f32 0.5, %v493_v53 }
 0x1dd   :  { %v497_v57 = vpop.eup %496  ;;  %v154_v58 = vmul.f32 0.5, %v495_v55  ;;  %v156_v60 = vadd.f32 0.5, %v152_v54 }
 0x1de   :  { %v155_v59 = vmul.f32 0.5, %v497_v57  ;;  %v157_v62 = vadd.f32 0.5, %v153_v56 }
 0x1df   :  { %v158_v61 = vadd.f32 0.5, %v154_v58 }
 0x1e0   :  { %v159_v63 = vadd.f32 0.5, %v155_v59 }
 0x1e1   :  { %v160_v0 = vpack.c.bf16 %v158_v61, %v156_v60 }
 0x1e2   :  { %v161_v1 = vpack.c.bf16 %v159_v63, %v157_v62 }
 0x1e4   :  { %162 = vmatprep.subr.bf16.mxu0 %v161_v1 }
 0x1e5   :  { %163 = vmatpush1.bf16.msra.mxu0 %v160_v0 }
 0x1e8   :  { %475 = vmatmul.mubr.msk.bf16.vlgmr.msra.gmra.mrb[4].mxu0 %vm36_vm0, %v583_v10 }
 0x1e9   :  { %316 = vmatprep.mubr.bf16.mxu0 %v538_v3 }
 0x2bb   :  { %v196_v2 = vpop.f32.mrb[4].mxu0 }
 0x2bc   :  { %v197_v4 = vadd.f32 %v196_v2, %v591_v12  ;;  %v198_v5 = vpop.f32.mrb[5].mxu0 }
 0x2bd   :  { %v199_v6 = vadd.f32 %v198_v5, %v591_v12  ;;  %v200_v7 = vpop.f32.mrb[6].mxu0 }
 0x2be   :  { %v205_v8 = vmul.f32 0.5, %v197_v4  ;;  %v201_v9 = vadd.f32 %v200_v7, %v594_v16  ;;  %v202_v11 = vpop.f32.mrb[7].mxu0 }
 0x2bf   :  { %v206_v13 = vmul.f32 0.5, %v199_v6  ;;  %v203_v14 = vadd.f32 %v202_v11, %v594_v16 }
 0x2c0   :  { %498 = vtanh.f32 %v205_v8  ;;  %v207_v15 = vmul.f32 0.5, %v201_v9 }
 0x2c1   :  { %500 = vtanh.f32 %v206_v13  ;;  %v208_v17 = vmul.f32 0.5, %v203_v14 }
 0x2c2   :  { %502 = vtanh.f32 %v207_v15 }
 0x2c3   :  { %504 = vtanh.f32 %v208_v17 }
 0x2ca   :  { %v499_v18 = vpop.eup %498 }
 0x2cb   :  { %v501_v19 = vpop.eup %500  ;;  %v213_v20 = vmul.f32 0.5, %v499_v18 }
 0x2cc   :  { %v503_v21 = vpop.eup %502  ;;  %v214_v22 = vmul.f32 0.5, %v501_v19 }
 0x2cd   :  { %v505_v23 = vpop.eup %504  ;;  %v215_v24 = vmul.f32 0.5, %v503_v21  ;;  %v217_v26 = vadd.f32 0.5, %v213_v20 }
 0x2ce   :  { %v216_v25 = vmul.f32 0.5, %v505_v23  ;;  %v218_v28 = vadd.f32 0.5, %v214_v22 }
 0x2cf   :  { %v219_v27 = vadd.f32 0.5, %v215_v24 }
 0x2d0   :  { %v220_v29 = vadd.f32 0.5, %v216_v25 }
 0x2d1   :  { %v221_v30 = vpack.c.bf16 %v219_v27, %v217_v26 }
 0x2d2   :  { %v222_v31 = vpack.c.bf16 %v220_v29, %v218_v28 }
 0x2d4   :  { %223 = vmatprep.subr.bf16.mxu1 %v222_v31 }
 0x2d5   :  { %224 = vmatpush1.bf16.msra.mxu1 %v221_v30 }
 0x2d8   :  { %476 = vmatmul.mubr.msk.bf16.vlgmr.msra.gmra.mrb[4].mxu1 %vm36_vm0, %v583_v10 }
 0x2d9   :  { %377 = vmatprep.mubr.bf16.mxu1 %v538_v3 }
 0x3ab   :  { %v257_v32 = vpop.f32.mrb[4].mxu1 }
 0x3ac   :  { %v258_v33 = vadd.f32 %v257_v32, %v591_v12  ;;  %v259_v34 = vpop.f32.mrb[5].mxu1 }
 0x3ad   :  { %v260_v35 = vadd.f32 %v259_v34, %v591_v12  ;;  %v261_v36 = vpop.f32.mrb[6].mxu1 }
 0x3ae   :  { %v266_v37 = vmul.f32 0.5, %v258_v33  ;;  %v262_v38 = vadd.f32 %v261_v36, %v594_v16  ;;  %v263_v39 = vpop.f32.mrb[7].mxu1 }
 0x3af   :  { %v267_v40 = vmul.f32 0.5, %v260_v35  ;;  %v264_v41 = vadd.f32 %v263_v39, %v594_v16 }
 0x3b0   :  { %506 = vtanh.f32 %v266_v37  ;;  %v268_v42 = vmul.f32 0.5, %v262_v38 }
 0x3b1   :  { %508 = vtanh.f32 %v267_v40  ;;  %v269_v43 = vmul.f32 0.5, %v264_v41 }
 0x3b2   :  { %510 = vtanh.f32 %v268_v42 }
 0x3b3   :  { %512 = vtanh.f32 %v269_v43 }
 0x3ba   :  { %v507_v44 = vpop.eup %506 }
 0x3bb   :  { %v509_v45 = vpop.eup %508  ;;  %v274_v46 = vmul.f32 0.5, %v507_v44 }
 0x3bc   :  { %v511_v47 = vpop.eup %510  ;;  %v275_v48 = vmul.f32 0.5, %v509_v45 }
 0x3bd   :  { %v513_v49 = vpop.eup %512  ;;  %v276_v50 = vmul.f32 0.5, %v511_v47  ;;  %v278_v52 = vadd.f32 0.5, %v274_v46 }
 0x3be   :  { %v277_v51 = vmul.f32 0.5, %v513_v49  ;;  %v279_v54 = vadd.f32 0.5, %v275_v48 }
 0x3bf   :  { %v280_v53 = vadd.f32 0.5, %v276_v50 }
 0x3c0   :  { %v281_v55 = vadd.f32 0.5, %v277_v51 }
 0x3c1   :  { %v282_v56 = vpack.c.bf16 %v280_v53, %v278_v52 }
 0x3c2   :  { %v283_v57 = vpack.c.bf16 %v281_v55, %v279_v54 }
 0x3c4   :  { %284 = vmatprep.subr.bf16.mxu0 %v283_v57 }
 0x3c5   :  { %285 = vmatpush1.bf16.msra.mxu0 %v282_v56 }
 0x3c8   :  { %477 = vmatmul.mubr.msk.bf16.vlgmr.msra.gmra.mrb[8].mxu0 %vm36_vm0, %v583_v10 }
 0x3c9   :  { %438 = vmatprep.mubr.bf16.mxu0 %v538_v3 }
 0x49b   :  { %v318_v58 = vpop.f32.mrb[8].mxu0 }
 0x49c   :  { %v319_v59 = vadd.f32 %v318_v58, %v591_v12  ;;  %v320_v60 = vpop.f32.mrb[9].mxu0 }
 0x49d   :  { %v321_v61 = vadd.f32 %v320_v60, %v591_v12  ;;  %v322_v62 = vpop.f32.mrb[10].mxu0 }
 0x49e   :  { %v327_v63 = vmul.f32 0.5, %v319_v59  ;;  %v323_v0 = vadd.f32 %v322_v62, %v594_v16  ;;  %v324_v1 = vpop.f32.mrb[11].mxu0 }
 0x49f   :  { %v328_v2 = vmul.f32 0.5, %v321_v61  ;;  %v325_v4 = vadd.f32 %v324_v1, %v594_v16 }
 0x4a0   :  { %514 = vtanh.f32 %v327_v63  ;;  %v329_v5 = vmul.f32 0.5, %v323_v0 }
 0x4a1   :  { %516 = vtanh.f32 %v328_v2  ;;  %v330_v6 = vmul.f32 0.5, %v325_v4 }
 0x4a2   :  { %518 = vtanh.f32 %v329_v5 }
 0x4a3   :  { %520 = vtanh.f32 %v330_v6 }
 0x4aa   :  { %v515_v3 = vpop.eup %514 }
 0x4ab   :  { %v517_v7 = vpop.eup %516  ;;  %v335_v8 = vmul.f32 0.5, %v515_v3 }
 0x4ac   :  { %v519_v9 = vpop.eup %518  ;;  %v336_v11 = vmul.f32 0.5, %v517_v7 }
 0x4ad   :  { %v521_v13 = vpop.eup %520  ;;  %v337_v14 = vmul.f32 0.5, %v519_v9  ;;  %v339_v17 = vadd.f32 0.5, %v335_v8 }
 0x4ae   :  { %v338_v15 = vmul.f32 0.5, %v521_v13  ;;  %v340_v19 = vadd.f32 0.5, %v336_v11 }
 0x4af   :  { %v341_v18 = vadd.f32 0.5, %v337_v14 }
 0x4b0   :  { %v342_v20 = vadd.f32 0.5, %v338_v15 }
 0x4b1   :  { %v343_v21 = vpack.c.bf16 %v341_v18, %v339_v17 }
 0x4b2   :  { %v344_v22 = vpack.c.bf16 %v342_v20, %v340_v19 }
 0x4b4   :  { %345 = vmatprep.subr.bf16.mxu1 %v344_v22 }
 0x4b5   :  { %346 = vmatpush1.bf16.msra.mxu1 %v343_v21 }
 0x4b8   :  { %478 = vmatmul.mubr.msk.bf16.vlgmr.msra.gmra.mrb[8].mxu1 %vm36_vm0, %v583_v10 }
 0x58b   :  { %v379_v23 = vpop.f32.mrb[8].mxu1 }
 0x58c   :  { %v380_v24 = vadd.f32 %v379_v23, %v591_v12  ;;  %v381_v25 = vpop.f32.mrb[9].mxu1 }
 0x58d   :  { %v382_v26 = vadd.f32 %v381_v25, %v591_v12  ;;  %v383_v27 = vpop.f32.mrb[10].mxu1 }
 0x58e   :  { %v388_v28 = vmul.f32 0.5, %v380_v24  ;;  %v384_v29 = vadd.f32 %v383_v27, %v594_v16  ;;  %v385_v30 = vpop.f32.mrb[11].mxu1 }
 0x58f   :  { %v389_v31 = vmul.f32 0.5, %v382_v26  ;;  %v386_v32 = vadd.f32 %v385_v30, %v594_v16 }
 0x590   :  { %522 = vtanh.f32 %v388_v28  ;;  %v390_v33 = vmul.f32 0.5, %v384_v29 }
 0x591   :  { %524 = vtanh.f32 %v389_v31  ;;  %v391_v34 = vmul.f32 0.5, %v386_v32 }
 0x592   :  { %526 = vtanh.f32 %v390_v33 }
 0x593   :  { %528 = vtanh.f32 %v391_v34 }
 0x59a   :  { %v523_v35 = vpop.eup %522 }
 0x59b   :  { %v525_v36 = vpop.eup %524  ;;  %v396_v37 = vmul.f32 0.5, %v523_v35 }
 0x59c   :  { %v527_v38 = vpop.eup %526  ;;  %v397_v39 = vmul.f32 0.5, %v525_v36 }
 0x59d   :  { %v529_v40 = vpop.eup %528  ;;  %v398_v41 = vmul.f32 0.5, %v527_v38  ;;  %v400_v43 = vadd.f32 0.5, %v396_v37 }
 0x59e   :  { %v399_v42 = vmul.f32 0.5, %v529_v40  ;;  %v401_v45 = vadd.f32 0.5, %v397_v39 }
 0x59f   :  { %v402_v44 = vadd.f32 0.5, %v398_v41 }
 0x5a0   :  { %v403_v46 = vadd.f32 0.5, %v399_v42 }
 0x5a1   :  { %v404_v47 = vpack.c.bf16 %v402_v44, %v400_v43 }
 0x5a2   :  { %v405_v48 = vpack.c.bf16 %v403_v46, %v401_v45 }
 0x5a4   :  { %406 = vmatprep.subr.bf16.mxu0 %v405_v48 }
 0x5a5   :  { %407 = vmatpush1.bf16.msra.mxu0 %v404_v47 }
 0x5a8   :  { %479 = vmatmul.mubr.msk.bf16.vlgmr.msra.gmra.mrb[12].mxu0 %vm36_vm0, %v583_v10 }
 0x67b   :  { %v440_v49 = vpop.f32.mrb[12].mxu0 }
 0x67c   :  { %v441_v50 = vadd.f32 %v440_v49, %v591_v12  ;;  %v442_v51 = vpop.f32.mrb[13].mxu0 }
 0x67d   :  { %v443_v52 = vadd.f32 %v442_v51, %v591_v12  ;;  %v444_v53 = vpop.f32.mrb[14].mxu0 }
 0x67e   :  { %v449_v54 = vmul.f32 0.5, %v441_v50  ;;  %v445_v55 = vadd.f32 %v444_v53, %v594_v16  ;;  %v446_v56 = vpop.f32.mrb[15].mxu0 }
 0x67f   :  { %v450_v57 = vmul.f32 0.5, %v443_v52  ;;  %v447_v58 = vadd.f32 %v446_v56, %v594_v16 }
 0x680   :  { %530 = vtanh.f32 %v449_v54  ;;  %v451_v59 = vmul.f32 0.5, %v445_v55 }
 0x681   :  { %532 = vtanh.f32 %v450_v57  ;;  %v452_v60 = vmul.f32 0.5, %v447_v58 }
 0x682   :  { %534 = vtanh.f32 %v451_v59 }
 0x683   :  { %536 = vtanh.f32 %v452_v60 }
 0x68a   :  { %v531_v10 = vpop.eup %530 }
 0x68b   :  { %v533_v61 = vpop.eup %532  ;;  %v457_v62 = vmul.f32 0.5, %v531_v10 }
 0x68c   :  { %v535_v63 = vpop.eup %534  ;;  %v458_v0 = vmul.f32 0.5, %v533_v61 }
 0x68d   :  { %v537_v12 = vpop.eup %536  ;;  %v461_v1 = vadd.f32 0.5, %v457_v62  ;;  %v459_v2 = vmul.f32 0.5, %v535_v63 }
 0x68e   :  { %v462_v4 = vadd.f32 0.5, %v458_v0  ;;  %v460_v5 = vmul.f32 0.5, %v537_v12 }
 0x68f   :  { %465 = vst [vmem:[%s654_s3] sm:$0xff] %v461_v1  ;;  %v463_v16 = vadd.f32 0.5, %v459_v2 }
 0x690   :  { %466 = vst [vmem:[%s654_s3 + $0x8] sm:$0xff] %v462_v4  ;;  %v464_v6 = vadd.f32 0.5, %v460_v5 }
 0x691   :  { %467 = vst [vmem:[%s654_s3 + $0x10] sm:$0xff] %v463_v16 }
 0x692   :  { %468 = vst [vmem:[%s654_s3 + $0x18] sm:$0xff] %v464_v6 }

</bundles_post_ra>
